<compile_context>
chip_gen: v6e
topology: v6e:2x2x1
jax: 0.10.0
libtpu: 0.0.40
codegen_flags: <defaults>
</compile_context>

<pallas_src>
import functools

import jax
import jax.numpy as jnp
from jax.experimental import pallas as pl
from jax.experimental.pallas import tpu as pltpu

_BN_EPS = 1e-5
_LANE = 128
_SUBLANE = 8


def _round_up(x, m):
    return (x + m - 1) // m * m


def _vmem_capacity_bytes():
    """Physical VMEM per TensorCore; conservative 64 MiB (v7x) if unknown."""
    try:
        info = pltpu.get_tpu_info()
        cap = getattr(info, "vmem_capacity_bytes", None)
        if cap:
            return int(cap)
    except Exception:
        pass
    return 64 * 1024 * 1024


def _num_tensorcores():
    """TensorCores per chip (v7x has 2); default 1 if unknown."""
    try:
        info = pltpu.get_tpu_info()
        for name in ("num_cores", "num_tensorcores", "tensorcore_count",
                     "cores_per_chip"):
            v = getattr(info, name, None)
            if v:
                return int(v)
    except Exception:
        pass
    return 1


def _bn_relu_epilogue(y, gamma, beta, *, act, last, n_real):
    """Training-mode BatchNorm1d (biased variance) folded to scale/shift + ReLU."""
    if not last:
        n_rows = y.shape[0]
        inv_n = jnp.float32(1.0 / n_real)
        # Padded batch rows are exact zeros, so the sum only sees real rows.
        mean = jnp.sum(y, axis=0, keepdims=True) * inv_n
        centered = y - mean
        if n_rows != n_real:
            row = jax.lax.broadcasted_iota(jnp.int32, y.shape, 0)
            sq = jnp.where(row < n_real, centered * centered, 0.0)
        else:
            sq = centered * centered
        var = jnp.sum(sq, axis=0, keepdims=True) * inv_n
        scale = gamma * jax.lax.rsqrt(var + _BN_EPS)    # rsqrt -> EUP slot
        shift = beta - mean * scale
        y = y * scale + shift                           # 2 VALU ops / element
    if act:
        y = jnp.maximum(y, 0.0)
    return y


def _kernel_single_k(x_ref, w_ref, g_ref, b_ref, o_ref, *, act, last, n_real):
    # grid = (j,) over out_feature tiles; full K contraction in a single dot.
    # x's index_map is constant, so the activation slab is DMA'd only once.
    y = jnp.dot(x_ref[...], w_ref[...], preferred_element_type=jnp.float32)
    y = _bn_relu_epilogue(y, g_ref[...], b_ref[...],
                          act=act, last=last, n_real=n_real)
    o_ref[...] = y.astype(o_ref.dtype)


def _kernel_tiled_k(x_ref, w_ref, g_ref, b_ref, o_ref, acc_ref, *, act, last,
                    n_real):
    # grid = (j ["parallel"], k ["arbitrary"]); f32 VMEM accumulator over K.
    k = pl.program_id(1)

    @pl.when(k == 0)
    def _():
        acc_ref[...] = jnp.zeros_like(acc_ref)

    acc_ref[...] += jnp.dot(x_ref[...], w_ref[...],
                            preferred_element_type=jnp.float32)

    @pl.when(k == pl.num_programs(1) - 1)
    def _():
        y = _bn_relu_epilogue(acc_ref[...], g_ref[...], b_ref[...],
                              act=act, last=last, n_real=n_real)
        o_ref[...] = y.astype(o_ref.dtype)


def _pad_cast_2d(a, rows, cols, dtype):
    """Cast + zero-pad to (rows, cols); no copy when already aligned + typed."""
    r, c = a.shape
    if a.dtype != dtype:
        a = a.astype(dtype)
    if r == rows and c == cols:
        return a
    return jnp.zeros((rows, cols), dtype).at[:r, :c].set(a)


def linear_block(x, w, b=None, gamma=None, beta=None, *, act=True, last=False,
                 compute_dtype=None, out_dtype=None):
    """Fused Linear(+BN)(+ReLU).

    x: (N, in_f); w: (in_f, out_f) (pre-transposed); gamma/beta: (out_f,) or
    (1, out_f). `b` is accepted for API parity but never needed in the forward:
    training-mode BN cancels it and the last layer has bias=False.
    compute_dtype: MXU operand dtype (e.g. jnp.bfloat16); out_dtype: output.
    """
    del b
    # TODO(synk): BatchNorm1d running_mean/running_var updates and the
    # eval-mode (running-stats) normalization path are not implemented.
    n, in_f = x.shape
    in_w, out_f = w.shape
    assert in_w == in_f, "w must be pre-transposed as (in_features, out_features)"

    cd = jnp.dtype(compute_dtype) if compute_dtype is not None else jnp.dtype(x.dtype)
    od = jnp.dtype(out_dtype) if out_dtype is not None else jnp.dtype(x.dtype)
    s_in = cd.itemsize
    s_out = od.itemsize

    vmem_cap = _vmem_capacity_bytes()
    num_cores = _num_tensorcores()
    budget = int(0.75 * vmem_cap)

    sublane = 16 if s_in < 4 else _SUBLANE      # sub-32-bit packs 2 rows/sublane
    n_pad = _round_up(n, sublane)
    in_pad = _round_up(in_f, _LANE)
    out_pad = _round_up(out_f, _LANE)

    # --- VMEM footprints (bytes): double-buffered blocks + BN epilogue temps ---
    def fp_single(tn_):
        return (2 * n_pad * in_pad * s_in        # x slab (constant over grid)
                + 2 * in_pad * tn_ * s_in        # W tile
                + 2 * n_pad * tn_ * s_out        # out tile
                + 3 * n_pad * tn_ * 4            # matmul result + BN temporaries
                + 2 * 2 * tn_ * 4)               # gamma/beta rows

    def fp_tiled(tn_, tk_):
        return (2 * n_pad * tk_ * s_in
                + 2 * tk_ * tn_ * s_in
                + n_pad * tn_ * 4                # f32 accumulator scratch
                + 2 * n_pad * tn_ * s_out
                + 3 * n_pad * tn_ * 4
                + 2 * 2 * tn_ * 4)

    def candidates(dim_pad, cap):
        return [t for t in range(_LANE, min(dim_pad, cap) + 1, _LANE)
                if dim_pad % t == 0]

    def pick(dim_pad, cap, fits, want_split):
        cands = [t for t in candidates(dim_pad, cap) if fits(t)]
        if not cands:
            return None
        if want_split and num_cores > 1:
            # keep >= num_cores blocks on the "parallel" axis so no TC idles (v7x)
            min_blocks = min(num_cores, dim_pad // _LANE)
            split = [t for t in cands if dim_pad // t >= min_blocks]
            if split:
                cands = split
        # prefer 256-wide tiles (v6e/v7x MXU is 256x256), then the largest
        c256 = [t for t in cands if t % 256 == 0]
        return max(c256) if c256 else max(cands)

    single_k = fp_single(_LANE) <= budget
    if single_k:
        tn = pick(out_pad, 512, lambda t: fp_single(t) <= budget, True)
        tk = in_pad
        grid = (out_pad // tn,)
        footprint = fp_single(tn)
    else:
        tn = pick(out_pad, 512, lambda t: fp_tiled(t, _LANE) <= budget, True)
        if tn is None:
            # TODO(synk): batch so large that an (n_pad, 128) f32 slab alone busts
            # VMEM; needs a two-pass (stats reduction + normalize) BN scheme.
            tn = _LANE
        tk = pick(in_pad, 1024, lambda t: fp_tiled(tn, t) <= budget, False) or _LANE
        grid = (out_pad // tn, in_pad // tk)
        footprint = fp_tiled(tn, tk)

    vmem_limit = int(min(max(footprint + (4 << 20), 32 << 20),
                         int(0.9 * vmem_cap)))

    # --- operands (cast + pad only when needed; padded gamma cols are zero) ---
    xp = _pad_cast_2d(x, n_pad, in_pad, cd)
    wp = _pad_cast_2d(w, in_pad, out_pad, cd)
    if gamma is None:
        gamma = jnp.ones((1, out_f), jnp.float32)
    if beta is None:
        beta = jnp.zeros((1, out_f), jnp.float32)
    gp = _pad_cast_2d(jnp.reshape(gamma, (1, out_f)), 1, out_pad, jnp.float32)
    bp = _pad_cast_2d(jnp.reshape(beta, (1, out_f)), 1, out_pad, jnp.float32)

    n_x_reads = 1 if single_k else grid[0]       # tiled-K re-reads x per j tile
    cost = pl.CostEstimate(
        flops=2 * n_pad * in_pad * out_pad,
        transcendentals=0 if last else out_pad,
        bytes_accessed=(n_x_reads * n_pad * in_pad * s_in
                        + in_pad * out_pad * s_in
                        + 2 * out_pad * 4
                        + n_pad * out_pad * s_out),
    )

    if single_k:
        kernel = functools.partial(_kernel_single_k, act=act, last=last, n_real=n)
        grid_spec = pltpu.PrefetchScalarGridSpec(
            num_scalar_prefetch=0,
            grid=grid,
            in_specs=[
                pl.BlockSpec((n_pad, in_pad), lambda j: (0, 0)),   # x, DMA'd once
                pl.BlockSpec((in_pad, tn), lambda j: (0, j)),      # W tile
                pl.BlockSpec((1, tn), lambda j: (0, j)),           # gamma
                pl.BlockSpec((1, tn), lambda j: (0, j)),           # beta
            ],
            out_specs=pl.BlockSpec((n_pad, tn), lambda j: (0, j)),
        )
        dims = ("parallel",)
    else:
        kernel = functools.partial(_kernel_tiled_k, act=act, last=last, n_real=n)
        grid_spec = pltpu.PrefetchScalarGridSpec(
            num_scalar_prefetch=0,
            grid=grid,
            in_specs=[
                pl.BlockSpec((n_pad, tk), lambda j, k: (0, k)),    # x
                pl.BlockSpec((tk, tn), lambda j, k: (k, j)),       # W
                pl.BlockSpec((1, tn), lambda j, k: (0, j)),        # gamma
                pl.BlockSpec((1, tn), lambda j, k: (0, j)),        # beta
            ],
            out_specs=pl.BlockSpec((n_pad, tn), lambda j, k: (0, j)),
            scratch_shapes=[pltpu.VMEM((n_pad, tn), jnp.float32)],
        )
        dims = ("parallel", "arbitrary")

    out_padded = pl.pallas_call(
        kernel,
        out_shape=jax.ShapeDtypeStruct((n_pad, out_pad), od),
        grid_spec=grid_spec,
        compiler_params=pltpu.CompilerParams(
            dimension_semantics=dims,
            vmem_limit_bytes=vmem_limit,
        ),
        cost_estimate=cost,
    )(xp, wp, gp, bp)

    if n_pad == n and out_pad == out_f:
        return out_padded
    return out_padded[:n, :out_f]


def linear_block_reference(x, w, b, gamma, beta, *, act=True, last=False):
    """PyTorch-faithful reference (bias included when not last)."""
    y = x @ w
    if not last:
        y = y + b
        mean = jnp.mean(y, axis=0, keepdims=True)
        var = jnp.mean((y - mean) ** 2, axis=0, keepdims=True)
        y = gamma * (y - mean) / jnp.sqrt(var + _BN_EPS) + beta
    if act:
        y = jnp.maximum(y, 0.0)
    return y


if __name__ == "__main__":
    # Small shapes consistent with the module: batch=8, in=32, out=32.
    batch, in_features, out_features = 8, 32, 32

    key = jax.random.PRNGKey(0)
    kx, kw, kb = jax.random.split(key, 3)

    x = jax.random.normal(kx, (batch, in_features), dtype=jnp.float32)
    bound = 1.0 / (in_features ** 0.5)
    w = jax.random.uniform(kw, (in_features, out_features),
                           minval=-bound, maxval=bound, dtype=jnp.float32)
    b = jax.random.uniform(kb, (1, out_features),
                           minval=-bound, maxval=bound, dtype=jnp.float32)
    gamma = jnp.ones((1, out_features), dtype=jnp.float32)   # BN weight
    beta = jnp.zeros((1, out_features), dtype=jnp.float32)   # BN bias

    # Default path: Linear -> BN -> ReLU (f32 operands, tight tolerance).
    ref = linear_block_reference(x, w, b, gamma, beta, act=True, last=False)
    out = jax.block_until_ready(
        linear_block(x, w, b, gamma, beta, act=True, last=False))
    assert out.shape == (batch, out_features)
    assert jnp.allclose(out, ref, atol=1e-4, rtol=1e-4), "mismatch (not-last path)"

    # Last layer path: Linear (no bias) -> Identity -> ReLU.
    ref_last = linear_block_reference(x, w, b, gamma, beta, act=True, last=True)
    out_last = jax.block_until_ready(
        linear_block(x, w, None, None, None, act=True, last=True))
    assert jnp.allclose(out_last, ref_last, atol=1e-5, rtol=1e-5), "mismatch (last path)"

    # bf16 MXU-operand path (f32 accumulation), loose tolerance.
    out_bf16 = jax.block_until_ready(
        linear_block(x, w, b, gamma, beta, act=True, last=False,
                     compute_dtype=jnp.bfloat16))
    assert out_bf16.shape == (batch, out_features)
    assert jnp.allclose(out_bf16, ref, atol=1e-1, rtol=0.0), "mismatch (bf16 path)"

    print("KERNEL_OK")
</pallas_src>

<mosaic_0001>
module attributes {stable_mosaic.version = 11 : i64} {
  func.func @_kernel_single_k(%arg0: i32, %arg1: memref<8x128xf32, #tpu.memory_space<vmem>>, %arg2: memref<128x128xf32, #tpu.memory_space<vmem>>, %arg3: memref<1x128xf32, #tpu.memory_space<vmem>>, %arg4: memref<1x128xf32, #tpu.memory_space<vmem>>, %arg5: memref<8x128xf32, #tpu.memory_space<vmem>>) attributes {dimension_semantics = [#tpu.dimension_semantics<parallel>], iteration_bounds = array<i64: 1>, scalar_prefetch = 0 : i64, scratch_operands = 0 : i64, tpu.core_type = #tpu.core_type<tc>, window_params = [{pipeline_mode = #tpu.pipeline_mode<synchronous>, transform_indices = @transform_0, window_bounds = array<i64: 8, 128>}, {transform_indices = @transform_1, window_bounds = array<i64: 128, 128>}, {transform_indices = @transform_2, window_bounds = array<i64: 1, 128>}, {transform_indices = @transform_3, window_bounds = array<i64: 1, 128>}, {transform_indices = @transform_4, window_bounds = array<i64: 8, 128>}]} {
    %c0 = arith.constant 0 : index
    %c0_0 = arith.constant 0 : index
    %0 = vector.load %arg1[%c0, %c0_0] : memref<8x128xf32, #tpu.memory_space<vmem>>, vector<8x128xf32>
    %c0_1 = arith.constant 0 : index
    %c0_2 = arith.constant 0 : index
    %1 = vector.load %arg2[%c0_1, %c0_2] : memref<128x128xf32, #tpu.memory_space<vmem>>, vector<128x128xf32>
    %cst = arith.constant dense<0.000000e+00> : vector<8x128xf32>
    %2 = tpu.matmul %0, %1, %cst {dimension_numbers = #tpu.dot_dimension_numbers<[1], [0], [0], [1], [0, 0, 1, 1], [], []>} : vector<8x128xf32>, vector<128x128xf32>, vector<8x128xf32> -> vector<8x128xf32>
    %c0_3 = arith.constant 0 : index
    %c0_4 = arith.constant 0 : index
    %3 = vector.load %arg3[%c0_3, %c0_4] : memref<1x128xf32, #tpu.memory_space<vmem>>, vector<1x128xf32>
    %c0_5 = arith.constant 0 : index
    %c0_6 = arith.constant 0 : index
    %4 = vector.load %arg4[%c0_5, %c0_6] : memref<1x128xf32, #tpu.memory_space<vmem>>, vector<1x128xf32>
    %cst_7 = arith.constant dense<0.000000e+00> : vector<128xf32>
    %5 = vector.multi_reduction <add>, %2, %cst_7 [0] : vector<8x128xf32> to vector<128xf32>
    %6 = vector.shape_cast %5 : vector<128xf32> to vector<1x128xf32>
    %cst_8 = arith.constant 1.250000e-01 : f32
    %7 = vector.broadcast %cst_8 : f32 to vector<1x128xf32>
    %8 = arith.mulf %6, %7 : vector<1x128xf32>
    %9 = vector.broadcast %8 : vector<1x128xf32> to vector<8x128xf32>
    %10 = arith.subf %2, %9 : vector<8x128xf32>
    %11 = arith.mulf %10, %10 : vector<8x128xf32>
    %cst_9 = arith.constant dense<0.000000e+00> : vector<128xf32>
    %12 = vector.multi_reduction <add>, %11, %cst_9 [0] : vector<8x128xf32> to vector<128xf32>
    %13 = vector.shape_cast %12 : vector<128xf32> to vector<1x128xf32>
    %cst_10 = arith.constant 1.250000e-01 : f32
    %14 = vector.broadcast %cst_10 : f32 to vector<1x128xf32>
    %15 = arith.mulf %13, %14 : vector<1x128xf32>
    %cst_11 = arith.constant 9.99999974E-6 : f32
    %16 = vector.broadcast %cst_11 : f32 to vector<1x128xf32>
    %17 = arith.addf %15, %16 : vector<1x128xf32>
    %18 = math.rsqrt %17 : vector<1x128xf32>
    %19 = arith.mulf %3, %18 : vector<1x128xf32>
    %20 = arith.mulf %8, %19 : vector<1x128xf32>
    %21 = arith.subf %4, %20 : vector<1x128xf32>
    %22 = vector.broadcast %19 : vector<1x128xf32> to vector<8x128xf32>
    %23 = arith.mulf %2, %22 : vector<8x128xf32>
    %24 = vector.broadcast %21 : vector<1x128xf32> to vector<8x128xf32>
    %25 = arith.addf %23, %24 : vector<8x128xf32>
    %cst_12 = arith.constant 0.000000e+00 : f32
    %26 = vector.broadcast %cst_12 : f32 to vector<8x128xf32>
    %27 = arith.maximumf %25, %26 : vector<8x128xf32>
    %c0_13 = arith.constant 0 : index
    %c0_14 = arith.constant 0 : index
    %28 = vector.load %arg5[%c0_13, %c0_14] : memref<8x128xf32, #tpu.memory_space<vmem>>, vector<8x128xf32>
    tpu.vector_store %arg5[%c0_13, %c0_14], %27 {strides = array<i32>} : memref<8x128xf32, #tpu.memory_space<vmem>>, vector<8x128xf32>,
    return
  }
  func.func @transform_0(%arg0: i32) -> (i32, i32) {
    %c0_i32 = arith.constant 0 : i32
    %c0_i32_0 = arith.constant 0 : i32
    %c0_i32_1 = arith.constant 0 : i32
    return %c0_i32, %c0_i32_0 : i32, i32
  }
  func.func @transform_1(%arg0: i32) -> (i32, i32) {
    %c0_i32 = arith.constant 0 : i32
    %c0_i32_0 = arith.constant 0 : i32
    return %c0_i32, %arg0 : i32, i32
  }
  func.func @transform_2(%arg0: i32) -> (i32, i32) {
    %c0_i32 = arith.constant 0 : i32
    %c0_i32_0 = arith.constant 0 : i32
    return %c0_i32, %arg0 : i32, i32
  }
  func.func @transform_3(%arg0: i32) -> (i32, i32) {
    %c0_i32 = arith.constant 0 : i32
    %c0_i32_0 = arith.constant 0 : i32
    return %c0_i32, %arg0 : i32, i32
  }
  func.func @transform_4(%arg0: i32) -> (i32, i32) {
    %c0_i32 = arith.constant 0 : i32
    %c0_i32_0 = arith.constant 0 : i32
    return %c0_i32, %arg0 : i32, i32
  }
}

</mosaic_0001>

<bundles_post_ra>
// kernel: tpu_custom_call.1
= control target key start
LH: loop header
LB: loop body
LE: loop exit
PB: predicated region body
PF: predicated region fallthrough
CT: control target
= control target key end

     0   :  { %9 = vsyncpa [#allocation3], 0  ;;  %s360_s0 = inlined_call_operand.hbm [shape: f32[8,128], index: 0, kind: input, shape index: {}]   ;;  %s361_s1 = inlined_call_operand.hbm [shape: f32[128,128], index: 1, kind: input, shape index: {}]   ;;  %s362_s2 = inlined_call_operand.vmem [shape: f32[1,128], index: 2, kind: input, shape index: {}]   ;;  %s363_s3 = inlined_call_operand.vmem [shape: f32[1,128], index: 3, kind: input, shape index: {}]   ;;  %s364_s4 = inlined_call_operand.hbm [shape: f32[8,128], index: 4, kind: output, shape index: {}]  }
   0x1   :  { %10 = vsyncpa [#allocation6], 0 }
   0x2   :  { %11 = vsyncpa [#allocation4], 0  ;;  %s313_s15 = smov [#allocation2]   ;;  %s314_s17 = smov [#allocation5]  }
   0x3   :  { %s18_s16 = sshll.u32 %s313_s15, 4  ;;  %s27_s18 = sshll.u32 %s314_s17, 4  ;;  %s19_s16 = int_to_ptr.vmem [resolvable:$true] %s18_s16  ;;  %s28_s18 = int_to_ptr.vmem [resolvable:$true] %s27_s18 }
   0x4   :  { %s255_s19 = scalar_lea.vmem %s19_s16, 128  ;;  %p260_p1 = scmp.lt.s32.totalorder %s19_s16, %s19_s16 }
   0x5   :  { %p256_p0 = scmp.ne.s32.totalorder %s19_s16, %s255_s19  ;;  %p261_p2 = scmp.lt.s32.totalorder %s255_s19, %s255_s19 }
   0x7   :  { %p262_p3 = por %p261_p2, %p260_p1 }
   0x9   :  { %p263_p4 = pnand %p262_p3, %p256_p0 }
   0xb   :  { %266 = shalt.err (!%p263_p4)
}
   0xc   :  { %21 = dma.hbm_to_vmem [thread:$0]  %s360_s0, 128, %s19_s16, [#allocation3]  }
   0xd   :  { %s275_s22 = scalar_lea.vmem %s28_s18, 2048  ;;  %p280_p6 = scmp.lt.s32.totalorder %s28_s18, %s28_s18 }
   0xe   :  { %p276_p5 = scmp.ne.s32.totalorder %s28_s18, %s275_s22  ;;  %p281_p7 = scmp.lt.s32.totalorder %s275_s22, %s275_s22 }
  0x10   :  { %p282_p8 = por %p281_p7, %p280_p6 }
  0x12   :  { %p283_p9 = pnand %p282_p8, %p276_p5 }
  0x14   :  { %286 = shalt.err (!%p283_p9)
}
  0x15   :  { %s315_s23 = smov 128   ;;  %s316_s24 = smov 8  }
  0x16   :  { %33 = dma.hbm_to_vmem [thread:$0]  %s361_s1, 2048, %s28_s18, [#allocation6], %s315_s23, %s315_s23, %s316_s24  }
  0x17   :  { %307 = dma.done.wait [#allocation3], 128  }
  0x18   :  { %308 = vsyncadd [#allocation3], 4294967168 }
  0x19   :  { %309 = dma.done.wait [#allocation6], 2048  }
  0x1a   :  { %310 = vsyncadd [#allocation6], 4294965248  ;;  %v317_v0 = vmov 0.0   ;;  %vm318_vm0 = vmmov 0   ;;  %v60_v1 = vld [vmem:[#allocation5 + $0x78] sm:$0xff]  ;;  %v59_v2 = vld [vmem:[#allocation5 + $0x70] sm:$0xff]  ;;  %v155_v37 = vlaneseq }
  0x1b   :  { %203 = vmatprep.subr.mxu0 %v317_v0  ;;  %235 = vmatprep.mubr.msk.f32.mxu0 %vm318_vm0, %v317_v0  ;;  %v58_v3 = vld [vmem:[#allocation5 + $0x68] sm:$0xff]  ;;  %v57_v4 = vld [vmem:[#allocation5 + $0x60] sm:$0xff]  ;;  %v56_v5 = vld [vmem:[#allocation5 + $0x58] sm:$0xff]  ;;  %s319_s29 = smov [#allocation7]  }
  0x1c   :  { %204 = vmatpush3.msra.mxu0 %v60_v1  ;;  %v55_v6 = vld [vmem:[#allocation5 + $0x50] sm:$0xff]  ;;  %v54_v7 = vld [vmem:[#allocation5 + $0x48] sm:$0xff]  ;;  %v53_v8 = vld [vmem:[#allocation5 + $0x40] sm:$0xff]  ;;  %v156_v38 = vshrl.u32 %v155_v37, 7  ;;  %s176_s30 = sshll.u32 %s319_s29, 4  ;;  %s177_s30 = int_to_ptr.vmem [resolvable:$true] %s176_s30 }
  0x1d   :  { %205 = vmatprep.subr.mxu0 %v317_v0  ;;  %v52_v9 = vld [vmem:[#allocation5 + $0x38] sm:$0xff]  ;;  %v51_v10 = vld [vmem:[#allocation5 + $0x30] sm:$0xff]  ;;  %v50_v11 = vld [vmem:[#allocation5 + $0x28] sm:$0xff]  ;;  %s287_s5 = scalar_lea.vmem %s177_s30, 128  ;;  %p292_p11 = scmp.lt.s32.totalorder %s177_s30, %s177_s30 }
  0x1e   :  { %206 = vmatpush3.msra.mxu0 %v59_v2  ;;  %v49_v12 = vld [vmem:[#allocation5 + $0x20] sm:$0xff]  ;;  %v48_v13 = vld [vmem:[#allocation5 + $0x18] sm:$0xff]  ;;  %v47_v14 = vld [vmem:[#allocation5 + $0x10] sm:$0xff]  ;;  %v157_v40 = vsub.s32 0, %v156_v38  ;;  %p288_p10 = scmp.ne.s32.totalorder %s177_s30, %s287_s5  ;;  %p293_p12 = scmp.lt.s32.totalorder %s287_s5, %s287_s5 }
  0x1f   :  { %207 = vmatprep.subr.mxu0 %v317_v0  ;;  %v46_v15 = vld [vmem:[#allocation5 + $0x8] sm:$0xff]  ;;  %v45_v16 = vld [vmem:[#allocation5] sm:$0xff]  ;;  %v44_v17 = vld [vmem:[#allocation2] sm:$0xff] }
  0x20   :  { %208 = vmatpush3.msra.mxu0 %v58_v3  ;;  %v131_v39 = vld [vmem:[%s362_s2] sm:$0x1]  ;;  %p294_p13 = por %p293_p12, %p292_p11 }
  0x21   :  { %209 = vmatprep.subr.mxu0 %v317_v0  ;;  %v132_v43 = vld [vmem:[%s363_s3] sm:$0x1] }
  0x22   :  { %210 = vmatpush3.msra.mxu0 %v57_v4  ;;  %p295_p0 = pnand %p294_p13, %p288_p10 }
  0x23   :  { %211 = vmatprep.subr.mxu0 %v317_v0 }
  0x24   :  { %212 = vmatpush3.msra.mxu0 %v56_v5 }
  0x25   :  { %213 = vmatprep.subr.mxu0 %v317_v0 }
  0x26   :  { %214 = vmatpush3.msra.mxu0 %v55_v6 }
  0x27   :  { %215 = vmatprep.subr.mxu0 %v317_v0 }
  0x28   :  { %216 = vmatpush3.msra.mxu0 %v54_v7 }
  0x29   :  { %217 = vmatprep.subr.mxu0 %v317_v0 }
  0x2a   :  { %218 = vmatpush3.msra.mxu0 %v53_v8 }
  0x2b   :  { %219 = vmatprep.subr.mxu0 %v317_v0 }
  0x2c   :  { %220 = vmatpush3.msra.mxu0 %v52_v9 }
  0x2d   :  { %221 = vmatprep.subr.mxu0 %v317_v0 }
  0x2e   :  { %222 = vmatpush3.msra.mxu0 %v51_v10 }
  0x2f   :  { %223 = vmatprep.subr.mxu0 %v317_v0 }
  0x30   :  { %224 = vmatpush3.msra.mxu0 %v50_v11 }
  0x31   :  { %225 = vmatprep.subr.mxu0 %v317_v0 }
  0x32   :  { %226 = vmatpush3.msra.mxu0 %v49_v12 }
  0x33   :  { %227 = vmatprep.subr.mxu0 %v317_v0 }
  0x34   :  { %228 = vmatpush3.msra.mxu0 %v48_v13 }
  0x35   :  { %229 = vmatprep.subr.mxu0 %v317_v0 }
  0x36   :  { %230 = vmatpush3.msra.mxu0 %v47_v14 }
  0x37   :  { %231 = vmatprep.subr.mxu0 %v317_v0 }
  0x38   :  { %232 = vmatpush3.msra.mxu0 %v46_v15 }
  0x39   :  { %233 = vmatprep.subr.mxu0 %v317_v0 }
  0x3a   :  { %234 = vmatpush3.msra.mxu0 %v45_v16 }
  0x3b   :  { %236 = vmatmul.mubr.f32.vlgmr.msra.gmra.mxu0 %v44_v17 }
  0xfb   :  { %v127_v18 = vpop.f32.mrf.mxu0 }
  0xfc   :  { %v133_v19 = vrot.slane %v127_v18, 4 }
  0xfd   :  { %v237_v20 = vpop.f32.mrf.mxu0 }
  0xfe   :  { %v134_v21 = vadd.f32 %v133_v19, %v127_v18 }
 0x100   :  { %v135_v22 = vrot.slane %v134_v21, 2 }
 0x102   :  { %v136_v23 = vadd.f32 %v135_v22, %v134_v21 }
 0x104   :  { %v137_v24 = vrot.slane %v136_v23, 1 }
 0x106   :  { %v138_v25 = vadd.f32 %v137_v24, %v136_v23 }
 0x108   :  { %v139_v26 = vmul.f32 0.125, %v138_v25 }
 0x10a   :  { %v140_v27 = vsub.f32 %v127_v18, %v139_v26 }
 0x10c   :  { %v141_v28 = vmul.f32 %v140_v27, %v140_v27 }
 0x10e   :  { %v142_v29 = vrot.slane %v141_v28, 4 }
 0x110   :  { %v143_v30 = vadd.f32 %v142_v29, %v141_v28 }
 0x112   :  { %v144_v31 = vrot.slane %v143_v30, 2 }
 0x114   :  { %v145_v32 = vadd.f32 %v144_v31, %v143_v30 }
 0x116   :  { %v146_v33 = vrot.slane %v145_v32, 1 }
 0x118   :  { %v147_v34 = vadd.f32 %v146_v33, %v145_v32 }
 0x11a   :  { %v148_v35 = vmul.f32 0.125, %v147_v34 }
 0x11c   :  { %v149_v36 = vadd.f32 1e-05, %v148_v35 }
 0x11e   :  { %245 = vrsqrt.f32 %v149_v36 }
 0x12b   :  { %v246_v41 = vpop.eup %245 }
 0x12c   :  { %v151_v42 = vmul.f32 %v246_v41, %v131_v39 }
 0x12e   :  { %v152_v44 = vmul.f32 %v151_v42, %v139_v26  ;;  %v158_v45 = vrot.slane %v151_v42, %v157_v40 }
 0x130   :  { %v153_v46 = vsub.f32 %v132_v43, %v152_v44  ;;  %v160_v47 = vmul.f32 %v158_v45, %v127_v18 }
 0x132   :  { %v165_v48 = vrot.slane %v153_v46, %v157_v40 }
 0x134   :  { %v167_v49 = vadd.f32 %v165_v48, %v160_v47 }
 0x136   :  { %v168_v50 = vmax.f32 %v167_v49, 0.0 }
 0x138   :  { %169 = vst [vmem:[#allocation7] sm:$0xff] %v168_v50 }
 0x139   :  { %298 = shalt.err (!%p295_p0)
}
 0x13a   :  { %179 = dma.vmem_to_hbm [thread:$0]  %s177_s30, 128, %s364_s4, [#allocation4]  }
 0x13b   :  { %311 = dma.done.wait [#allocation4], 128  }
 0x13c   :  { %312 = vsyncadd [#allocation4], 4294967168 }
 0x13d   :  { %183 = vsyncpa [#allocation3], 1 }
 0x13e   :  { %184 = vsyncpa [#allocation6], 1 }
 0x13f   :  { %185 = vsyncpa [#allocation4], 1 }

</bundles_post_ra>
